<compile_context>
chip_gen: v5e
topology: v5e:2x2
jax: 0.10.0
libtpu: 0.0.40
codegen_flags: <defaults>
</compile_context>

<pallas_src>
import functools
import math

import jax
import jax.numpy as jnp
from jax.experimental import pallas as pl
from jax.experimental.pallas import tpu as pltpu

# SelfTrainingLoss.__init__ defaults.
CONF_TH = 0.9
FRACTION = 0.66
IGNORE_INDEX = 255          # handled via the mask (masked-out pixels contribute 0)
LAMBDA_SELFTRAIN = 1.0

NBINS = 128                 # histogram bins for the per-class top-k threshold

_NEG_LOG_CONF = (-math.log(CONF_TH)) if 0.0 < CONF_TH < 1.0 else -float("inf")
_USE_TOPK = 0.0 < FRACTION < 1.0


def _vmem_limit():
    """Generation-aware scoped-VMEM limit (v7x has 64 MiB physical, v5e/v6e 128 MiB)."""
    try:
        cap = int(pltpu.get_tpu_info().vmem_capacity_bytes)
    except Exception:
        cap = 128 * 1024 * 1024
    return int(min(max(cap // 2, 16 * 1024 * 1024), 64 * 1024 * 1024))


_VMEM_LIMIT = _vmem_limit()


def _choose_tile(n, target):
    """Largest divisor of n that is <= target and a multiple of 8 (or == n)."""
    best = None
    for d in range(1, min(n, target) + 1):
        if n % d == 0 and (d % 8 == 0 or d == n):
            best = d
    return best if best is not None else n


def _spatial_layout(sn, target):
    """Tile size + a 2-wide parallel split (keeps both v7x TensorCores busy at B=1)."""
    s_tile = _choose_tile(sn, target)
    n_tiles = sn // s_tile
    p = 2 if (n_tiles >= 2 and n_tiles % 2 == 0) else 1
    return s_tile, p, n_tiles // p


def _stats_spatial_target(c, in_bytes, vmem_limit):
    # double-buffered pred block + double-buffered ce/lab blocks; keep half the
    # limit for the one-hots / hist accumulator / compiler scratch.
    per_sublane = 128 * (2 * c * in_bytes + 2 * (4 + 4))
    return int(max(8, min((vmem_limit // 2) // per_sublane, 256)))


def _sum_spatial_target(vmem_limit):
    per_sublane = 128 * 2 * (4 + 4)       # ce + lab, double-buffered
    return int(max(8, min((vmem_limit // 2) // per_sublane, 1024)))


def _stats_hist_kernel(pred_ref, ce_ref, lab_ref, hist_ref):
    """pred_ref: (1, C, S, 128) native dtype; ce_ref/lab_ref: (1, S, 128);
    hist_ref: (1, 1, CP, NBINS) accumulated over the (last, "arbitrary") grid axis."""
    t = pl.program_id(2)
    C = pred_ref.shape[1]
    S = pred_ref.shape[2]
    CP = hist_ref.shape[2]

    # ---- running max / argmax over the leading channel axis (pure VPU) ----
    # TODO(synk): for very large C (>~32) switch these channel loops to
    # lax.fori_loop(..., unroll=8) to bound vreg live ranges.
    best = pred_ref[0, 0].astype(jnp.float32)
    lab = jnp.zeros(best.shape, jnp.int32)
    for c in range(1, C):
        xc = pred_ref[0, c].astype(jnp.float32)
        upd = xc > best
        best = jnp.where(upd, xc, best)
        lab = jnp.where(upd, c, lab)            # first-occurrence argmax

    # ---- two-pass sum-exp over channels (EUP exp, leading-axis adds) ----
    ssum = jnp.zeros(best.shape, jnp.float32)
    for c in range(C):
        ssum = ssum + jnp.exp(pred_ref[0, c].astype(jnp.float32) - best)
    ce = jnp.log(ssum)                          # = lse - max = -log(max softmax prob) >= 0

    ce_ref[...] = ce[None]
    lab_ref[...] = lab[None]

    # ---- per-class confidence histogram (replaces the full sort) ----
    @pl.when(t == 0)
    def _():
        hist_ref[...] = jnp.zeros_like(hist_ref)

    mp = jnp.exp(-ce)
    bins = jnp.clip((mp * NBINS).astype(jnp.int32), 0, NBINS - 1)      # (S, 128)

    # iotas hoisted out of the chunk loop (JAX does not CSE broadcast_in_dim)
    c_iota = jax.lax.broadcasted_iota(jnp.int32, (1, CP, 128), 1)
    b_iota = jax.lax.broadcasted_iota(jnp.int32, (1, NBINS, 128), 1)

    chunk = math.gcd(S, 16)                      # bounds the (chunk, NBINS, 128) live set
    acc = jnp.zeros((CP, NBINS), jnp.float32)
    for i in range(S // chunk):                  # static loop, <= 16 iterations
        lab_c = lab[i * chunk:(i + 1) * chunk]   # (chunk, 128)
        bin_c = bins[i * chunk:(i + 1) * chunk]
        lab_oh = (lab_c[:, None, :] == c_iota).astype(jnp.bfloat16)    # (chunk, CP, 128)
        bin_oh = (bin_c[:, None, :] == b_iota).astype(jnp.bfloat16)    # (chunk, NBINS, 128)
        # batched MXU matmul (batch=chunk, contract over the 128 lanes):
        #   hist[c, b] += sum_p lab_oh[s, c, p] * bin_oh[s, b, p]
        part = jnp.einsum('scp,sbp->scb', lab_oh, bin_oh,
                          preferred_element_type=jnp.float32)
        acc = acc + jnp.sum(part, axis=0)        # leading-axis VPU adds
    hist_ref[...] += acc[None, None]


def _masked_sum_kernel(ce_ref, lab_ref, nlthr_ref, out_ref, *, num_classes):
    """ce_ref/lab_ref: (1, S, 128); nlthr_ref: (B, C) f32 in SMEM (= -log thr);
    out_ref: (1, 1, PS, 128) lane-dense per-(batch, split) partial sums."""
    b = pl.program_id(0)
    t = pl.program_id(2)

    @pl.when(t == 0)
    def _():
        out_ref[...] = jnp.zeros_like(out_ref)

    ce = ce_ref[0]                               # (S, 128), = -log(max prob) >= 0
    lab = lab_ref[0]
    sel = ce < _NEG_LOG_CONF                     # max_prob > conf_th
    # per-class top-fraction threshold: table held in SMEM, select in-kernel
    # (no pix_thr HBM tensor, no XLA where-chain).
    # TODO(synk): for very large C a lane gather of the threshold table would
    # replace this static select chain.
    for c in range(num_classes):
        thr_c = nlthr_ref[b, c]                  # scalar SMEM read
        sel = sel | ((lab == c) & (ce <= thr_c))  # max_prob >= thr[c]
    contrib = jnp.where(sel, ce, 0.0)            # ignore_index pixels contribute 0
    S = contrib.shape[0]
    PS = out_ref.shape[2]
    part = jnp.sum(contrib.reshape(S // PS, PS, 128), axis=0)          # (PS, 128)
    out_ref[...] += part[None, None]


def _pallas_stats(pred4, cp):
    B, C, Sn, _ = pred4.shape
    in_bytes = jnp.dtype(pred4.dtype).itemsize
    s_tile, P, T = _spatial_layout(Sn, _stats_spatial_target(C, in_bytes, _VMEM_LIMIT))
    return pl.pallas_call(
        _stats_hist_kernel,
        out_shape=(jax.ShapeDtypeStruct((B, Sn, 128), jnp.float32),    # ce
                   jax.ShapeDtypeStruct((B, Sn, 128), jnp.int32),      # pseudo-label
                   jax.ShapeDtypeStruct((B, P, cp, NBINS), jnp.float32)),
        grid=(B, P, T),
        in_specs=[pl.BlockSpec((1, C, s_tile, 128),
                               lambda b, p, t: (b, 0, p * T + t, 0))],
        out_specs=(pl.BlockSpec((1, s_tile, 128), lambda b, p, t: (b, p * T + t, 0)),
                   pl.BlockSpec((1, s_tile, 128), lambda b, p, t: (b, p * T + t, 0)),
                   pl.BlockSpec((1, 1, cp, NBINS), lambda b, p, t: (b, p, 0, 0))),
        compiler_params=pltpu.CompilerParams(
            dimension_semantics=("parallel", "parallel", "arbitrary"),
            vmem_limit_bytes=_VMEM_LIMIT),
    )(pred4)


def _pallas_masked_sum(ce, lab, nlthr, num_classes):
    B, Sn, _ = ce.shape
    m_tile, P, T = _spatial_layout(Sn, _sum_spatial_target(_VMEM_LIMIT))
    ps = math.gcd(m_tile, 8)
    kernel = functools.partial(_masked_sum_kernel, num_classes=num_classes)
    partials = pl.pallas_call(
        kernel,
        out_shape=jax.ShapeDtypeStruct((B, P, ps, 128), jnp.float32),
        grid=(B, P, T),
        in_specs=[pl.BlockSpec((1, m_tile, 128), lambda b, p, t: (b, p * T + t, 0)),
                  pl.BlockSpec((1, m_tile, 128), lambda b, p, t: (b, p * T + t, 0)),
                  pl.BlockSpec(memory_space=pltpu.MemorySpace.SMEM)],
        out_specs=pl.BlockSpec((1, 1, ps, 128), lambda b, p, t: (b, p, 0, 0)),
        compiler_params=pltpu.CompilerParams(
            dimension_semantics=("parallel", "parallel", "arbitrary"),
            vmem_limit_bytes=_VMEM_LIMIT),
    )(ce, lab, nlthr)
    return jnp.sum(partials)                     # tiny lane-dense reduction in glue


@jax.jit
def self_training_loss(pred):
    """pred: (B, C, H, W) float logits (NCHW, like PyTorch)."""
    B, C, H, W = pred.shape
    HW = H * W
    if HW % 128 != 0:
        # TODO(synk): non-multiple-of-128 spatial sizes need pad+mask plumbing.
        raise ValueError("H*W must be a multiple of 128 for this kernel")
    Sn = HW // 128
    cp = max(8, ((C + 7) // 8) * 8)              # pad class axis for aligned hist tiles

    pred4 = pred.reshape(B, C, Sn, 128)          # native dtype; upcast happens in-kernel
    ce, lab, hist_p = _pallas_stats(pred4, cp)

    if _USE_TOPK:
        hist = jnp.sum(hist_p, axis=1)[:, :C, :]               # (B, C, NBINS)
        counts = jnp.sum(hist, axis=-1)                        # class pixel counts
        k = jnp.floor(counts * FRACTION)                       # k = int(count * fraction)
        rc = jnp.cumsum(hist[..., ::-1], axis=-1)[..., ::-1]   # #pixels with bin >= j
        valid = rc >= jnp.maximum(k, 1.0)[..., None]           # non-increasing -> prefix
        jstar = jnp.sum(valid.astype(jnp.int32), axis=-1) - 1  # bin holding the k-th value
        thr = jstar.astype(jnp.float32) / float(NBINS)
        # carry -log(thr): masks are identical (monotone), pass 2 needs no exp/log.
        nlthr = jnp.where(k >= 1.0, -jnp.log(jnp.maximum(thr, 0.0)), -1.0)
    else:
        nlthr = jnp.full((B, C), -1.0, jnp.float32)            # top-k disabled

    total = _pallas_masked_sum(ce, lab, nlthr.astype(jnp.float32), C)
    return total / (B * HW) * LAMBDA_SELFTRAIN


if __name__ == "__main__":
    key = jax.random.PRNGKey(0)
    # small shapes consistent with segmentation logits: batch=2, classes=4, 16x16
    pred = 3.0 * jax.random.normal(key, (2, 4, 16, 16), dtype=jnp.float32)
    loss = self_training_loss(pred)
    jax.block_until_ready(loss)
    print("KERNEL_OK")
</pallas_src>

<mosaic_0001>
module attributes {stable_mosaic.version = 11 : i64} {
  func.func @_stats_hist_kernel(%arg0: i32, %arg1: i32, %arg2: i32, %arg3: memref<1x4x2x128xf32, #tpu.memory_space<vmem>>, %arg4: memref<1x2x128xf32, #tpu.memory_space<vmem>>, %arg5: memref<1x2x128xi32, #tpu.memory_space<vmem>>, %arg6: memref<1x1x8x128xf32, #tpu.memory_space<vmem>>) attributes {dimension_semantics = [#tpu.dimension_semantics<parallel>, #tpu.dimension_semantics<parallel>, #tpu.dimension_semantics<arbitrary>], iteration_bounds = array<i64: 2, 1, 1>, scalar_prefetch = 0 : i64, scratch_operands = 0 : i64, tpu.core_type = #tpu.core_type<tc>, window_params = [{transform_indices = @transform_0, window_bounds = array<i64: 1, 4, 2, 128>}, {transform_indices = @transform_1, window_bounds = array<i64: 1, 2, 128>}, {transform_indices = @transform_2, window_bounds = array<i64: 1, 2, 128>}, {transform_indices = @transform_3, window_bounds = array<i64: 1, 1, 8, 128>}]} {
    %c0 = arith.constant 0 : index
    %c0_0 = arith.constant 0 : index
    %c0_1 = arith.constant 0 : index
    %c0_2 = arith.constant 0 : index
    %0 = vector.load %arg3[%c0, %c0_0, %c0_1, %c0_2] : memref<1x4x2x128xf32, #tpu.memory_space<vmem>>, vector<1x1x2x128xf32>
    %1 = vector.shape_cast %0 : vector<1x1x2x128xf32> to vector<2x128xf32>
    %c0_i32 = arith.constant 0 : i32
    %2 = vector.broadcast %c0_i32 : i32 to vector<2x128xi32>
    %c0_3 = arith.constant 0 : index
    %c1 = arith.constant 1 : index
    %c0_4 = arith.constant 0 : index
    %c0_5 = arith.constant 0 : index
    %3 = vector.load %arg3[%c0_3, %c1, %c0_4, %c0_5] : memref<1x4x2x128xf32, #tpu.memory_space<vmem>>, vector<1x1x2x128xf32>
    %4 = vector.shape_cast %3 : vector<1x1x2x128xf32> to vector<2x128xf32>
    %5 = arith.cmpf ogt, %4, %1 : vector<2x128xf32>
    %6 = arith.select %5, %4, %1 : vector<2x128xi1>, vector<2x128xf32>
    %c1_i32 = arith.constant 1 : i32
    %7 = vector.broadcast %c1_i32 : i32 to vector<2x128xi32>
    %8 = arith.select %5, %7, %2 : vector<2x128xi1>, vector<2x128xi32>
    %c0_6 = arith.constant 0 : index
    %c2 = arith.constant 2 : index
    %c0_7 = arith.constant 0 : index
    %c0_8 = arith.constant 0 : index
    %9 = vector.load %arg3[%c0_6, %c2, %c0_7, %c0_8] : memref<1x4x2x128xf32, #tpu.memory_space<vmem>>, vector<1x1x2x128xf32>
    %10 = vector.shape_cast %9 : vector<1x1x2x128xf32> to vector<2x128xf32>
    %11 = arith.cmpf ogt, %10, %6 : vector<2x128xf32>
    %12 = arith.select %11, %10, %6 : vector<2x128xi1>, vector<2x128xf32>
    %c2_i32 = arith.constant 2 : i32
    %13 = vector.broadcast %c2_i32 : i32 to vector<2x128xi32>
    %14 = arith.select %11, %13, %8 : vector<2x128xi1>, vector<2x128xi32>
    %c0_9 = arith.constant 0 : index
    %c3 = arith.constant 3 : index
    %c0_10 = arith.constant 0 : index
    %c0_11 = arith.constant 0 : index
    %15 = vector.load %arg3[%c0_9, %c3, %c0_10, %c0_11] : memref<1x4x2x128xf32, #tpu.memory_space<vmem>>, vector<1x1x2x128xf32>
    %16 = vector.shape_cast %15 : vector<1x1x2x128xf32> to vector<2x128xf32>
    %17 = arith.cmpf ogt, %16, %12 : vector<2x128xf32>
    %18 = arith.select %17, %16, %12 : vector<2x128xi1>, vector<2x128xf32>
    %c3_i32 = arith.constant 3 : i32
    %19 = vector.broadcast %c3_i32 : i32 to vector<2x128xi32>
    %20 = arith.select %17, %19, %14 : vector<2x128xi1>, vector<2x128xi32>
    %cst = arith.constant 0.000000e+00 : f32
    %21 = vector.broadcast %cst : f32 to vector<2x128xf32>
    %c0_12 = arith.constant 0 : index
    %c0_13 = arith.constant 0 : index
    %c0_14 = arith.constant 0 : index
    %c0_15 = arith.constant 0 : index
    %22 = vector.load %arg3[%c0_12, %c0_13, %c0_14, %c0_15] : memref<1x4x2x128xf32, #tpu.memory_space<vmem>>, vector<1x1x2x128xf32>
    %23 = vector.shape_cast %22 : vector<1x1x2x128xf32> to vector<2x128xf32>
    %24 = arith.subf %23, %18 : vector<2x128xf32>
    %25 = math.exp %24 : vector<2x128xf32>
    %26 = arith.addf %21, %25 : vector<2x128xf32>
    %c0_16 = arith.constant 0 : index
    %c1_17 = arith.constant 1 : index
    %c0_18 = arith.constant 0 : index
    %c0_19 = arith.constant 0 : index
    %27 = vector.load %arg3[%c0_16, %c1_17, %c0_18, %c0_19] : memref<1x4x2x128xf32, #tpu.memory_space<vmem>>, vector<1x1x2x128xf32>
    %28 = vector.shape_cast %27 : vector<1x1x2x128xf32> to vector<2x128xf32>
    %29 = arith.subf %28, %18 : vector<2x128xf32>
    %30 = math.exp %29 : vector<2x128xf32>
    %31 = arith.addf %26, %30 : vector<2x128xf32>
    %c0_20 = arith.constant 0 : index
    %c2_21 = arith.constant 2 : index
    %c0_22 = arith.constant 0 : index
    %c0_23 = arith.constant 0 : index
    %32 = vector.load %arg3[%c0_20, %c2_21, %c0_22, %c0_23] : memref<1x4x2x128xf32, #tpu.memory_space<vmem>>, vector<1x1x2x128xf32>
    %33 = vector.shape_cast %32 : vector<1x1x2x128xf32> to vector<2x128xf32>
    %34 = arith.subf %33, %18 : vector<2x128xf32>
    %35 = math.exp %34 : vector<2x128xf32>
    %36 = arith.addf %31, %35 : vector<2x128xf32>
    %c0_24 = arith.constant 0 : index
    %c3_25 = arith.constant 3 : index
    %c0_26 = arith.constant 0 : index
    %c0_27 = arith.constant 0 : index
    %37 = vector.load %arg3[%c0_24, %c3_25, %c0_26, %c0_27] : memref<1x4x2x128xf32, #tpu.memory_space<vmem>>, vector<1x1x2x128xf32>
    %38 = vector.shape_cast %37 : vector<1x1x2x128xf32> to vector<2x128xf32>
    %39 = arith.subf %38, %18 : vector<2x128xf32>
    %40 = math.exp %39 : vector<2x128xf32>
    %41 = arith.addf %36, %40 : vector<2x128xf32>
    %42 = math.log %41 : vector<2x128xf32>
    %43 = vector.shape_cast %42 : vector<2x128xf32> to vector<1x2x128xf32>
    %c0_28 = arith.constant 0 : index
    %c0_29 = arith.constant 0 : index
    %c0_30 = arith.constant 0 : index
    %44 = vector.load %arg4[%c0_28, %c0_29, %c0_30] : memref<1x2x128xf32, #tpu.memory_space<vmem>>, vector<1x2x128xf32>
    tpu.vector_store %arg4[%c0_28, %c0_29, %c0_30], %43 {strides = array<i32>} : memref<1x2x128xf32, #tpu.memory_space<vmem>>, vector<1x2x128xf32>,
    %45 = vector.shape_cast %20 : vector<2x128xi32> to vector<1x2x128xi32>
    %c0_31 = arith.constant 0 : index
    %c0_32 = arith.constant 0 : index
    %c0_33 = arith.constant 0 : index
    %46 = vector.load %arg5[%c0_31, %c0_32, %c0_33] : memref<1x2x128xi32, #tpu.memory_space<vmem>>, vector<1x2x128xi32>
    tpu.vector_store %arg5[%c0_31, %c0_32, %c0_33], %45 {strides = array<i32>} : memref<1x2x128xi32, #tpu.memory_space<vmem>>, vector<1x2x128xi32>,
    %c0_i32_34 = arith.constant 0 : i32
    %47 = arith.cmpi eq, %arg2, %c0_i32_34 : i32
    %48 = arith.extui %47 : i1 to i32
    %c0_i32_35 = arith.constant 0 : i32
    %49 = arith.cmpi ne, %48, %c0_i32_35 : i32
    scf.if %49 {
      %cst_50 = arith.constant 0.000000e+00 : f32
      %84 = vector.broadcast %cst_50 : f32 to vector<1x1x8x128xf32>
      %c0_51 = arith.constant 0 : index
      %c0_52 = arith.constant 0 : index
      %c0_53 = arith.constant 0 : index
      %c0_54 = arith.constant 0 : index
      %85 = vector.load %arg6[%c0_51, %c0_52, %c0_53, %c0_54] : memref<1x1x8x128xf32, #tpu.memory_space<vmem>>, vector<1x1x8x128xf32>
      tpu.vector_store %arg6[%c0_51, %c0_52, %c0_53, %c0_54], %84 {strides = array<i32>} : memref<1x1x8x128xf32, #tpu.memory_space<vmem>>, vector<1x1x8x128xf32>,
    } else {
    }
    %cst_36 = arith.constant 0.000000e+00 : f32
    %50 = vector.broadcast %cst_36 : f32 to vector<2x128xf32>
    %51 = arith.subf %50, %42 : vector<2x128xf32>
    %52 = math.exp %51 : vector<2x128xf32>
    %cst_37 = arith.constant 1.280000e+02 : f32
    %53 = vector.broadcast %cst_37 : f32 to vector<2x128xf32>
    %54 = arith.mulf %52, %53 : vector<2x128xf32>
    %55 = arith.fptosi %54 : vector<2x128xf32> to vector<2x128xi32>
    %c0_i32_38 = arith.constant 0 : i32
    %c127_i32 = arith.constant 127 : i32
    %56 = vector.broadcast %c0_i32_38 : i32 to vector<2x128xi32>
    %57 = arith.maxsi %56, %55 : vector<2x128xi32>
    %58 = vector.broadcast %c127_i32 : i32 to vector<2x128xi32>
    %59 = arith.minsi %58, %57 : vector<2x128xi32>
    %60 = tpu.iota {dimensions = array<i32: 1>} : vector<1x8x128xi32>
    %61 = tpu.iota {dimensions = array<i32: 1>} : vector<1x128x128xi32>
    %cst_39 = arith.constant 0.000000e+00 : f32
    %62 = vector.broadcast %cst_39 : f32 to vector<8x128xf32>
    %63 = vector.shape_cast %20 : vector<2x128xi32> to vector<2x1x128xi32>
    %64 = vector.broadcast %63 : vector<2x1x128xi32> to vector<2x8x128xi32>
    %65 = vector.broadcast %60 : vector<1x8x128xi32> to vector<2x8x128xi32>
    %66 = arith.cmpi eq, %64, %65 : vector<2x8x128xi32>
    %67 = arith.extui %66 : vector<2x8x128xi1> to vector<2x8x128xi32>
    %68 = arith.sitofp %67 : vector<2x8x128xi32> to vector<2x8x128xf32>
    %69 = arith.truncf %68 : vector<2x8x128xf32> to vector<2x8x128xbf16>
    %70 = vector.shape_cast %59 : vector<2x128xi32> to vector<2x1x128xi32>
    %71 = vector.broadcast %70 : vector<2x1x128xi32> to vector<2x128x128xi32>
    %72 = vector.broadcast %61 : vector<1x128x128xi32> to vector<2x128x128xi32>
    %73 = arith.cmpi eq, %71, %72 : vector<2x128x128xi32>
    %74 = arith.extui %73 : vector<2x128x128xi1> to vector<2x128x128xi32>
    %75 = arith.sitofp %74 : vector<2x128x128xi32> to vector<2x128x128xf32>
    %76 = arith.truncf %75 : vector<2x128x128xf32> to vector<2x128x128xbf16>
    "tpu.trace_start"() <{level = 10 : i32, message = "scp,sbp->scb"}> : () -> ()
    %cst_40 = arith.constant dense<0.000000e+00> : vector<2x8x128xf32>
    %77 = tpu.matmul %69, %76, %cst_40 {dimension_numbers = #tpu.dot_dimension_numbers<[2], [2], [1], [1], [0, 0, 0, 1, 1, 1], [0], [0]>} : vector<2x8x128xbf16>, vector<2x128x128xbf16>, vector<2x8x128xf32> -> vector<2x8x128xf32>
    "tpu.trace_stop"() : () -> ()
    %cst_41 = arith.constant dense<0.000000e+00> : vector<8x128xf32>
    %78 = vector.multi_reduction <add>, %77, %cst_41 [0] : vector<2x8x128xf32> to vector<8x128xf32>
    %79 = arith.addf %62, %78 : vector<8x128xf32>
    %c0_42 = arith.constant 0 : index
    %c0_43 = arith.constant 0 : index
    %c0_44 = arith.constant 0 : index
    %c0_45 = arith.constant 0 : index
    %80 = vector.load %arg6[%c0_42, %c0_43, %c0_44, %c0_45] : memref<1x1x8x128xf32, #tpu.memory_space<vmem>>, vector<1x1x8x128xf32>
    %81 = vector.shape_cast %79 : vector<8x128xf32> to vector<1x1x8x128xf32>
    %82 = arith.addf %80, %81 : vector<1x1x8x128xf32>
    %c0_46 = arith.constant 0 : index
    %c0_47 = arith.constant 0 : index
    %c0_48 = arith.constant 0 : index
    %c0_49 = arith.constant 0 : index
    %83 = vector.load %arg6[%c0_46, %c0_47, %c0_48, %c0_49] : memref<1x1x8x128xf32, #tpu.memory_space<vmem>>, vector<1x1x8x128xf32>
    tpu.vector_store %arg6[%c0_46, %c0_47, %c0_48, %c0_49], %82 {strides = array<i32>} : memref<1x1x8x128xf32, #tpu.memory_space<vmem>>, vector<1x1x8x128xf32>,
    return
  }
  func.func @transform_0(%arg0: i32, %arg1: i32, %arg2: i32) -> (i32, i32, i32, i32) {
    %c1_i32 = arith.constant 1 : i32
    %0 = arith.muli %arg1, %c1_i32 : i32
    %1 = arith.addi %0, %arg2 : i32
    %c0_i32 = arith.constant 0 : i32
    %c0_i32_0 = arith.constant 0 : i32
    %c0_i32_1 = arith.constant 0 : i32
    return %arg0, %c0_i32, %1, %c0_i32_0 : i32, i32, i32, i32
  }
  func.func @transform_1(%arg0: i32, %arg1: i32, %arg2: i32) -> (i32, i32, i32) {
    %c1_i32 = arith.constant 1 : i32
    %0 = arith.muli %arg1, %c1_i32 : i32
    %1 = arith.addi %0, %arg2 : i32
    %c0_i32 = arith.constant 0 : i32
    %c0_i32_0 = arith.constant 0 : i32
    return %arg0, %1, %c0_i32 : i32, i32, i32
  }
  func.func @transform_2(%arg0: i32, %arg1: i32, %arg2: i32) -> (i32, i32, i32) {
    %c1_i32 = arith.constant 1 : i32
    %0 = arith.muli %arg1, %c1_i32 : i32
    %1 = arith.addi %0, %arg2 : i32
    %c0_i32 = arith.constant 0 : i32
    %c0_i32_0 = arith.constant 0 : i32
    return %arg0, %1, %c0_i32 : i32, i32, i32
  }
  func.func @transform_3(%arg0: i32, %arg1: i32, %arg2: i32) -> (i32, i32, i32, i32) {
    %c0_i32 = arith.constant 0 : i32
    %c0_i32_0 = arith.constant 0 : i32
    %c0_i32_1 = arith.constant 0 : i32
    return %arg0, %arg1, %c0_i32, %c0_i32_0 : i32, i32, i32, i32
  }
}

module attributes {stable_mosaic.version = 11 : i64} {
  func.func @_masked_sum_kernel(%arg0: i32, %arg1: i32, %arg2: i32, %arg3: memref<1x2x128xf32, #tpu.memory_space<vmem>>, %arg4: memref<1x2x128xi32, #tpu.memory_space<vmem>>, %arg5: memref<2x4xf32, #tpu.memory_space<smem>>, %arg6: memref<1x1x2x128xf32, #tpu.memory_space<vmem>>) attributes {dimension_semantics = [#tpu.dimension_semantics<parallel>, #tpu.dimension_semantics<parallel>, #tpu.dimension_semantics<arbitrary>], iteration_bounds = array<i64: 2, 1, 1>, scalar_prefetch = 0 : i64, scratch_operands = 0 : i64, tpu.core_type = #tpu.core_type<tc>, window_params = [{transform_indices = @transform_0, window_bounds = array<i64: 1, 2, 128>}, {transform_indices = @transform_1, window_bounds = array<i64: 1, 2, 128>}, {transform_indices = @transform_2, window_bounds = array<i64: 2, 4>}, {transform_indices = @transform_3, window_bounds = array<i64: 1, 1, 2, 128>}]} {
    %c0_i32 = arith.constant 0 : i32
    %0 = arith.cmpi eq, %arg2, %c0_i32 : i32
    %1 = arith.extui %0 : i1 to i32
    %c0_i32_0 = arith.constant 0 : i32
    %2 = arith.cmpi ne, %1, %c0_i32_0 : i32
    scf.if %2 {
      %cst_18 = arith.constant 0.000000e+00 : f32
      %49 = vector.broadcast %cst_18 : f32 to vector<1x1x2x128xf32>
      %c0_19 = arith.constant 0 : index
      %c0_20 = arith.constant 0 : index
      %c0_21 = arith.constant 0 : index
      %c0_22 = arith.constant 0 : index
      %50 = vector.load %arg6[%c0_19, %c0_20, %c0_21, %c0_22] : memref<1x1x2x128xf32, #tpu.memory_space<vmem>>, vector<1x1x2x128xf32>
      tpu.vector_store %arg6[%c0_19, %c0_20, %c0_21, %c0_22], %49 {strides = array<i32>} : memref<1x1x2x128xf32, #tpu.memory_space<vmem>>, vector<1x1x2x128xf32>,
    } else {
    }
    %c0 = arith.constant 0 : index
    %c0_1 = arith.constant 0 : index
    %c0_2 = arith.constant 0 : index
    %3 = vector.load %arg3[%c0, %c0_1, %c0_2] : memref<1x2x128xf32, #tpu.memory_space<vmem>>, vector<1x2x128xf32>
    %4 = vector.shape_cast %3 : vector<1x2x128xf32> to vector<2x128xf32>
    %c0_3 = arith.constant 0 : index
    %c0_4 = arith.constant 0 : index
    %c0_5 = arith.constant 0 : index
    %5 = vector.load %arg4[%c0_3, %c0_4, %c0_5] : memref<1x2x128xi32, #tpu.memory_space<vmem>>, vector<1x2x128xi32>
    %6 = vector.shape_cast %5 : vector<1x2x128xi32> to vector<2x128xi32>
    %cst = arith.constant 0.105360515 : f32
    %7 = vector.broadcast %cst : f32 to vector<2x128xf32>
    %8 = arith.cmpf olt, %4, %7 : vector<2x128xf32>
    %9 = arith.index_cast %arg0 : i32 to index
    %c0_6 = arith.constant 0 : index
    %10 = memref.load %arg5[%9, %c0_6] : memref<2x4xf32, #tpu.memory_space<smem>>
    %c0_i32_7 = arith.constant 0 : i32
    %11 = vector.broadcast %c0_i32_7 : i32 to vector<2x128xi32>
    %12 = arith.cmpi eq, %6, %11 : vector<2x128xi32>
    %13 = vector.broadcast %10 : f32 to vector<2x128xf32>
    %14 = arith.cmpf ole, %4, %13 : vector<2x128xf32>
    %15 = arith.andi %12, %14 : vector<2x128xi1>
    %16 = arith.ori %8, %15 : vector<2x128xi1>
    %17 = arith.index_cast %arg0 : i32 to index
    %c1 = arith.constant 1 : index
    %18 = memref.load %arg5[%17, %c1] : memref<2x4xf32, #tpu.memory_space<smem>>
    %c1_i32 = arith.constant 1 : i32
    %19 = vector.broadcast %c1_i32 : i32 to vector<2x128xi32>
    %20 = arith.cmpi eq, %6, %19 : vector<2x128xi32>
    %21 = vector.broadcast %18 : f32 to vector<2x128xf32>
    %22 = arith.cmpf ole, %4, %21 : vector<2x128xf32>
    %23 = arith.andi %20, %22 : vector<2x128xi1>
    %24 = arith.ori %16, %23 : vector<2x128xi1>
    %25 = arith.index_cast %arg0 : i32 to index
    %c2 = arith.constant 2 : index
    %26 = memref.load %arg5[%25, %c2] : memref<2x4xf32, #tpu.memory_space<smem>>
    %c2_i32 = arith.constant 2 : i32
    %27 = vector.broadcast %c2_i32 : i32 to vector<2x128xi32>
    %28 = arith.cmpi eq, %6, %27 : vector<2x128xi32>
    %29 = vector.broadcast %26 : f32 to vector<2x128xf32>
    %30 = arith.cmpf ole, %4, %29 : vector<2x128xf32>
    %31 = arith.andi %28, %30 : vector<2x128xi1>
    %32 = arith.ori %24, %31 : vector<2x128xi1>
    %33 = arith.index_cast %arg0 : i32 to index
    %c3 = arith.constant 3 : index
    %34 = memref.load %arg5[%33, %c3] : memref<2x4xf32, #tpu.memory_space<smem>>
    %c3_i32 = arith.constant 3 : i32
    %35 = vector.broadcast %c3_i32 : i32 to vector<2x128xi32>
    %36 = arith.cmpi eq, %6, %35 : vector<2x128xi32>
    %37 = vector.broadcast %34 : f32 to vector<2x128xf32>
    %38 = arith.cmpf ole, %4, %37 : vector<2x128xf32>
    %39 = arith.andi %36, %38 : vector<2x128xi1>
    %40 = arith.ori %32, %39 : vector<2x128xi1>
    %cst_8 = arith.constant 0.000000e+00 : f32
    %41 = vector.broadcast %cst_8 : f32 to vector<2x128xf32>
    %42 = arith.select %40, %4, %41 : vector<2x128xi1>, vector<2x128xf32>
    %43 = vector.shape_cast %42 : vector<2x128xf32> to vector<1x2x128xf32>
    %cst_9 = arith.constant dense<0.000000e+00> : vector<2x128xf32>
    %44 = vector.multi_reduction <add>, %43, %cst_9 [0] : vector<1x2x128xf32> to vector<2x128xf32>
    %c0_10 = arith.constant 0 : index
    %c0_11 = arith.constant 0 : index
    %c0_12 = arith.constant 0 : index
    %c0_13 = arith.constant 0 : index
    %45 = vector.load %arg6[%c0_10, %c0_11, %c0_12, %c0_13] : memref<1x1x2x128xf32, #tpu.memory_space<vmem>>, vector<1x1x2x128xf32>
    %46 = vector.shape_cast %44 : vector<2x128xf32> to vector<1x1x2x128xf32>
    %47 = arith.addf %45, %46 : vector<1x1x2x128xf32>
    %c0_14 = arith.constant 0 : index
    %c0_15 = arith.constant 0 : index
    %c0_16 = arith.constant 0 : index
    %c0_17 = arith.constant 0 : index
    %48 = vector.load %arg6[%c0_14, %c0_15, %c0_16, %c0_17] : memref<1x1x2x128xf32, #tpu.memory_space<vmem>>, vector<1x1x2x128xf32>
    tpu.vector_store %arg6[%c0_14, %c0_15, %c0_16, %c0_17], %47 {strides = array<i32>} : memref<1x1x2x128xf32, #tpu.memory_space<vmem>>, vector<1x1x2x128xf32>,
    return
  }
  func.func @transform_0(%arg0: i32, %arg1: i32, %arg2: i32) -> (i32, i32, i32) {
    %c1_i32 = arith.constant 1 : i32
    %0 = arith.muli %arg1, %c1_i32 : i32
    %1 = arith.addi %0, %arg2 : i32
    %c0_i32 = arith.constant 0 : i32
    %c0_i32_0 = arith.constant 0 : i32
    return %arg0, %1, %c0_i32 : i32, i32, i32
  }
  func.func @transform_1(%arg0: i32, %arg1: i32, %arg2: i32) -> (i32, i32, i32) {
    %c1_i32 = arith.constant 1 : i32
    %0 = arith.muli %arg1, %c1_i32 : i32
    %1 = arith.addi %0, %arg2 : i32
    %c0_i32 = arith.constant 0 : i32
    %c0_i32_0 = arith.constant 0 : i32
    return %arg0, %1, %c0_i32 : i32, i32, i32
  }
  func.func @transform_2(%arg0: i32, %arg1: i32, %arg2: i32) -> (i32, i32) {
    %c0_i32 = arith.constant 0 : i32
    %c0_i32_0 = arith.constant 0 : i32
    %c0_i32_1 = arith.constant 0 : i32
    return %c0_i32, %c0_i32_0 : i32, i32
  }
  func.func @transform_3(%arg0: i32, %arg1: i32, %arg2: i32) -> (i32, i32, i32, i32) {
    %c0_i32 = arith.constant 0 : i32
    %c0_i32_0 = arith.constant 0 : i32
    %c0_i32_1 = arith.constant 0 : i32
    return %arg0, %arg1, %c0_i32, %c0_i32_0 : i32, i32, i32, i32
  }
}

</mosaic_0001>

<bundles_post_ra>
// kernel: self_training_loss.3
= control target key start
LH: loop header
LB: loop body
LE: loop exit
PB: predicated region body
PF: predicated region fallthrough
CT: control target
= control target key end

     0   :  { %8 = vsyncpa [#allocation3], 0  ;;  %s520_s12 = smov 0   ;;  %s522_s13 = smov 0   ;;  %s565_s0 = inlined_call_operand.vmem [shape: f32[2,2,128], index: 0, kind: input, shape index: {}]   ;;  %s566_s1 = inlined_call_operand.vmem [shape: s32[2,2,128], index: 1, kind: input, shape index: {}]   ;;  %s567_s2 = inlined_call_operand.vmem [shape: f32[2,4], index: 2, kind: input, shape index: {}]   ;;  %s568_s3 = inlined_call_operand.vmem [shape: f32[2,1,2,128], index: 3, kind: output, shape index: {}]  }
   0x1   :  { %s524_s14 = smov 0  }
   0x2 LB: > { %s406_s15 = sadd.s32 4294967295, %s496_s14   ;;  %s33_s16 = sadd.s32 1, %s492_s13  ;;  %s496_s14 = sphi %s524_s14, %s14_s14   ;;  %s492_s13 = sphi %s522_s13, %s570_s13   ;;  %s488_s12 = sphi %s520_s12, %s569_s12  }
   0x3   : > { %p35_p0 = scmp.ge.s32.totalorder %s33_s16, 2  ;;  %p408_p1 = scmp.ge.s32.totalorder %s496_s14, 1 }
   0x4   : > { %p147_p2 = scmp.lt.s32.totalorder %s496_s14, 3  ;;  %p427_p4 = scmp.eq.s32.totalorder %s406_s15, 0 }
   0x5   : > { %s572_s16 = smov (%p35_p0, %s33_s16), 0  ;;  %s159_s19 = sshll.u32 %s567_s2, 4  ;;  %s160_s19 = int_to_ptr.vmem [resolvable:$true] %s159_s19 }
   0x6   : > { %p148_p3 = pnand %p408_p1, %p147_p2  ;;  %s498_s20 = smov [#allocation2]  }
   0x8   : > { %p423_p5 = pneg %p148_p3  ;;  %196 = sbr.rel (%p148_p3) target bundleno = 37 (0x25), region = 32 }
   0xa   : > { %p424_p6 = pnand %p427_p4, %p423_p5 }
   0xc   : > { %426 = dma.vmem_to_smem (!%p424_p6), %s160_s19, 32, %s498_s20, [#allocation3]  }
   0xd   : > { %483 = dma.done.wait (%p427_p4), [#allocation3], 32  }
   0xe   : > { %485 = vsyncadd (%p427_p4), [#allocation3], 4294967264 }
   0xf   : > { %203 = sfence }
  0x10   : > { %p236_p7 = scmp.lt.s32.totalorder %s488_s12, 1  ;;  %s416_s21 = sshll.u32 %s488_s12, 7  ;;  %v499_v2 = vmov 0.0  }
  0x11   : > { %s269_s22 = sld [smem:[#allocation2 + %s416_s21]]  ;;  %s275_s23 = sadd.s32 1, %s416_s21 }
  0x12   : > { %s574_s12 = smov (!%p236_p7, %s488_s12), 1  ;;  %s276_s24 = sld [smem:[#allocation2 + %s275_s23]] }
  0x13   : > { %s282_s25 = sadd.s32 2, %s416_s21  ;;  %s413_s26 = sshll.u32 %s574_s12, 1 }
  0x14   : > { %s283_s27 = sld [smem:[#allocation2 + %s282_s25]]  ;;  %s242_s30 = scalar_lea.vmem %s565_s0, %s413_s26 }
  0x15   : > { %s251_s6 = scalar_lea.vmem %s566_s1, %s413_s26  ;;  %s551_s9 = scalar_lea.vmem %s568_s3, %s413_s26  ;;  %v265_v0 = vld [vmem:[%s242_s30] sm:$0x3] }
  0x16   : > { %v266_v1 = vld [vmem:[%s251_s6] sm:$0x3]  ;;  %s289_s10 = sadd.s32 3, %s416_s21  ;;  %264 = vst [vmem:[%s551_s9] sm:$0x3] %v499_v2  ;;  %vm267_vm1 = vcmp.lt.f32.partialorder %v265_v0, 0.105360515 }
  0x17   : > { %vm270_vm0 = vcmp.eq.s32.totalorder %v266_v1, 0  ;;  %v271_v3 = vstv %s269_s22  ;;  %s290_s11 = sld [smem:[#allocation2 + %s289_s10]]  ;;  %vm277_vm3 = vcmp.eq.s32.totalorder %v266_v1, 1  ;;  %vm284_vm7 = vcmp.eq.s32.totalorder %v266_v1, 2 }
  0x18   : > { %vm272_vm2 = vcmp.le.f32.partialorder %v265_v0, %v271_v3  ;;  %v278_v4 = vstv %s276_s24  ;;  %vm291_vm11 = vcmp.eq.s32.totalorder %v266_v1, 3 }
  0x19   : > { %vm273_vm4 = vmand %vm270_vm0, %vm272_vm2  ;;  %vm279_vm6 = vcmp.le.f32.partialorder %v265_v0, %v278_v4 }
  0x1a   : > { %vm274_vm5 = vmor %vm267_vm1, %vm273_vm4  ;;  %v285_v5 = vstv %s283_s27 }
  0x1b   : > { %vm280_vm8 = vmand %vm277_vm3, %vm279_vm6  ;;  %vm286_vm9 = vcmp.le.f32.partialorder %v265_v0, %v285_v5 }
  0x1c   : > { %vm281_vm10 = vmor %vm274_vm5, %vm280_vm8 }
  0x1d   : > { %vm287_vm12 = vmand %vm284_vm7, %vm286_vm9  ;;  %v292_v6 = vstv %s290_s11  ;;  %v298_v7 = vld [vmem:[%s551_s9] sm:$0x3] }
  0x1e   : > { %vm288_vm13 = vmor %vm281_vm10, %vm287_vm12  ;;  %vm293_vm14 = vcmp.le.f32.partialorder %v265_v0, %v292_v6 }
  0x1f   : > { %vm294_vm15 = vmand %vm291_vm11, %vm293_vm14 }
  0x20   : > { %vm295_vm0 = vmor %vm288_vm13, %vm294_vm15 }
  0x21   : > { %v296_v8 = vsel %vm295_vm0, %v265_v0, 0.0 }
  0x22   : > { %v299_v9 = vadd.f32 %v298_v7, %v296_v8 }
  0x24   : > { %300 = vst [vmem:[%s551_s9] sm:$0x3] %v299_v9 }
  0x25 PF: > { %s14_s14 = sadd.s32 1, %s496_s14   ;;  %s569_s12 = smov %s492_s13 }
  0x26   : > { %p11_p8 = scmp.ge.s32.totalorder %s14_s14, 4   ;;  %s570_s13 = smov %s572_s16 }
  0x28   :  { %13 = sbr.rel (!%p11_p8) target bundleno = 2 (0x2), region = 74 }
  0x2d   :  { %326 = vsyncpa [#allocation3], 1 }
  0x2e   :  { %328 = vsyncpa [#allocation3 + $0x1], 1 }

// kernel: self_training_loss.2
= control target key start
LH: loop header
LB: loop body
LE: loop exit
PB: predicated region body
PF: predicated region fallthrough
CT: control target
= control target key end

     0   :  { %s911_s12 = smov 0   ;;  %s913_s13 = smov 0   ;;  %s1097_s0 = inlined_call_operand.vmem [shape: f32[2,4,2,128], index: 0, kind: input, shape index: {}]   ;;  %s1098_s1 = inlined_call_operand.vmem [shape: f32[2,2,128], index: 1, kind: output, shape index: {0}]   ;;  %s1099_s2 = inlined_call_operand.vmem [shape: s32[2,2,128], index: 2, kind: output, shape index: {1}]   ;;  %s1100_s3 = inlined_call_operand.vmem [shape: f32[2,1,8,128], index: 3, kind: output, shape index: {2}]  }
   0x1   :  { %s915_s14 = smov 0  }
   0x2 LB: > { %s33_s15 = sadd.s32 1, %s882_s13  ;;  %p770_p0 = scmp.ge.s32.totalorder %s886_s14, 1  ;;  %s886_s14 = sphi %s915_s14, %s14_s14   ;;  %s882_s13 = sphi %s913_s13, %s1102_s13   ;;  %s878_s12 = sphi %s911_s12, %s1101_s12  }
   0x3   : > { %p35_p1 = scmp.ge.s32.totalorder %s33_s15, 2  ;;  %p180_p2 = scmp.lt.s32.totalorder %s886_s14, 3 }
   0x5   : > { %s1104_s15 = smov (%p35_p1, %s33_s15), 0  ;;  %p181_p3 = pnand %p770_p0, %p180_p2 }
   0x6   : > { %p227_p4 = scmp.lt.s32.totalorder (!%p181_p3), %s878_s12, 1 }
   0x7   : > { %184 = sbr.rel (%p181_p3) target bundleno = 280 (0x118), region = 24 }
   0xc   : > { %s1106_s12 = smov (!%p227_p4, %s878_s12), 1  ;;  %v311_v28 = vlaneseq  ;;  %v888_v45 = vmov 0.0  }
   0xd   : > { %s819_s16 = sshll.u32 %s1106_s12, 3  ;;  %s773_s20 = sshll.u32 %s1106_s12, 1 }
   0xe   : > { %s234_s19 = scalar_lea.vmem %s1097_s0, %s819_s16  ;;  %s243_s23 = scalar_lea.vmem %s1098_s1, %s773_s20  ;;  %v980_v33 = vshrl.u32 %v311_v28, 7 }
   0xf   : > { %v937_v0 = vld [vmem:[%s234_s19] sm:$0x3]  ;;  %v939_v1 = vld [vmem:[%s234_s19 + $0x2] sm:$0x3]  ;;  %v941_v2 = vld [vmem:[%s234_s19 + $0x4] sm:$0x3]  ;;  %s252_s26 = scalar_lea.vmem %s1099_s2, %s773_s20  ;;  %s260_s29 = scalar_lea.vmem %s1100_s3, %s819_s16 }
  0x10   : > { %vm264_vm0 = vcmp.gt.f32.partialorder %v939_v1, %v937_v0  ;;  %v952_v4 = vld [vmem:[%s234_s19 + $0x6] sm:$0x3]  ;;  %v326_v35 = vadd.s32 112, %v980_v33  ;;  %v327_v36 = vadd.s32 120, %v980_v33  ;;  %v324_v37 = vadd.s32 96, %v980_v33 }
  0x11   : > { %v950_v3 = vsel %vm264_vm0, %v939_v1, %v937_v0  ;;  %v325_v39 = vadd.s32 104, %v980_v33  ;;  %v322_v42 = vadd.s32 80, %v980_v33  ;;  %v323_v43 = vadd.s32 88, %v980_v33 }
  0x12   : > { %vm269_vm1 = vcmp.gt.f32.partialorder %v941_v2, %v950_v3 }
  0x13   : > { %v961_v5 = vsel %vm269_vm1, %v941_v2, %v950_v3 }
  0x14   : > { %vm274_vm2 = vcmp.gt.f32.partialorder %v952_v4, %v961_v5 }
  0x15   : > { %v275_v6 = vsel %vm274_vm2, %v952_v4, %v961_v5 }
  0x16   : > { %v277_v7 = vsub.f32 %v937_v0, %v275_v6  ;;  %v281_v8 = vsub.f32 %v939_v1, %v275_v6  ;;  %v285_v9 = vsub.f32 %v941_v2, %v275_v6  ;;  %v289_v10 = vsub.f32 %v952_v4, %v275_v6 }
  0x17   : > { %v313_v2 = vadd.s32 8, %v980_v33 }
  0x18   : > { %v278_v11 = vmul.f32 1.442695, %v277_v7  ;;  %v282_v12 = vmul.f32 1.442695, %v281_v8  ;;  %v286_v13 = vmul.f32 1.442695, %v285_v9 }
  0x19   : > { %v290_v14 = vmul.f32 1.442695, %v289_v10 }
  0x1a   : > { %852 = vpow2.f32 %v278_v11 }
  0x1b   : > { %854 = vpow2.f32 %v282_v12 }
  0x1c   : > { %856 = vpow2.f32 %v286_v13 }
  0x1d   : > { %858 = vpow2.f32 %v290_v14  ;;  %v320_v14 = vadd.s32 64, %v980_v33 }
  0x20   : > { %v853_v15 = vpop.eup %852 }
  0x21   : > { %v855_v16 = vpop.eup %854 }
  0x22   : > { %v857_v17 = vpop.eup %856  ;;  %v284_v18 = vadd.f32 %v855_v16, %v853_v15  ;;  %v321_v15 = vadd.s32 72, %v980_v33 }
  0x23   : > { %v859_v19 = vpop.eup %858 }
  0x24   : > { %v288_v20 = vadd.f32 %v857_v17, %v284_v18 }
  0x26   : > { %v292_v21 = vadd.f32 %v859_v19, %v288_v20 }
  0x28   : > { %860 = vlog2.f32 %v292_v21 }
  0x2e   : > { %v861_v22 = vpop.eup %860 }
  0x2f   : > { %v294_v23 = vmul.f32 0.6931472, %v861_v22 }
  0x31   : > { %v302_v24 = vsub.f32 0.0, %v294_v23  ;;  %295 = vst [vmem:[%s243_s23] sm:$0x3] %v294_v23 }
  0x33   : > { %v303_v25 = vmul.f32 1.442695, %v302_v24 }
  0x35   : > { %862 = vpow2.f32 %v303_v25 }
  0x3b   : > { %v863_v26 = vpop.eup %862 }
  0x3c   : > { %v305_v27 = vmul.f32 128.0, %v863_v26 }
  0x3e   : > { %vm820_vm3 = vcmp.lt.s32.totalorder %v305_v27, 0  ;;  %v821_v29 = vceil.f32 %v305_v27  ;;  %v822_v30 = vfloor.f32 %v305_v27 }
  0x40   : > { %v823_v31 = vsel %vm820_vm3, %v821_v29, %v822_v30  ;;  %v318_v30 = vadd.s32 48, %v980_v33 }
  0x41   : > { %v824_v32 = vcvt.f32.s32 %v823_v31  ;;  %v319_v31 = vadd.s32 56, %v980_v33 }
  0x43   : > { %vm307_vm4 = vcmp.gt.s32.totalorder %v824_v32, 0 }
  0x44   : > { %v308_v34 = vsel %vm307_vm4, %v824_v32, 0 }
  0x45   : > { %vm309_vm5 = vcmp.lt.s32.totalorder %v308_v34, 127 }
  0x46   : > { %v310_v38 = vsel %vm309_vm5, %v308_v34, 127 }
  0x47   : > { %v986_v40 = vperm.slane %v310_v38, 0  ;;  %v339_v41 = vrot.slane %v310_v38, 1 }
  0x49   : > { %vm356_vm6 = vcmp.eq.s32.totalorder %v986_v40, %v326_v35  ;;  %vm357_vm7 = vcmp.eq.s32.totalorder %v986_v40, %v327_v36  ;;  %v992_v44 = vperm.slane %v339_v41, 0  ;;  %vm354_vm8 = vcmp.eq.s32.totalorder %v986_v40, %v324_v37 }
  0x4a   : > { %v795_v46 = vsel %vm356_vm6, 1.0, %v888_v45  ;;  %v796_v47 = vsel %vm357_vm7, 1.0, %v888_v45  ;;  %vm355_vm9 = vcmp.eq.s32.totalorder %v986_v40, %v325_v39  ;;  %v793_v48 = vsel %vm354_vm8, 1.0, %v888_v45 }
  0x4b   : > { %v452_v49 = vpack.c.bf16 %v795_v46, %v795_v46  ;;  %v453_v50 = vpack.c.bf16 %v796_v47, %v796_v47  ;;  %vm372_vm10 = vcmp.eq.s32.totalorder %v992_v44, %v326_v35  ;;  %vm373_vm11 = vcmp.eq.s32.totalorder %v992_v44, %v327_v36 }
  0x4c   : > { %v811_v51 = vsel %vm372_vm10, 1.0, %v888_v45  ;;  %v812_v52 = vsel %vm373_vm11, 1.0, %v888_v45  ;;  %v794_v53 = vsel %vm355_vm9, 1.0, %v888_v45  ;;  %v450_v54 = vpack.c.bf16 %v793_v48, %v793_v48 }
  0x4d   : > { %v500_v55 = vunpack.c.l.b16 %v452_v49  ;;  %v501_v56 = vunpack.c.l.b16 %v453_v50  ;;  %v468_v57 = vpack.c.bf16 %v811_v51, %v811_v51  ;;  %v469_v58 = vpack.c.bf16 %v812_v52, %v812_v52 }
  0x4e   : > { %v451_v59 = vpack.c.bf16 %v794_v53, %v794_v53  ;;  %vm370_vm12 = vcmp.eq.s32.totalorder %v992_v44, %v324_v37  ;;  %vm371_vm13 = vcmp.eq.s32.totalorder %v992_v44, %v325_v39  ;;  %v498_v6 = vunpack.c.l.b16 %v450_v54 }
  0x4f   : > { %v509_v60 = vpack.c.b16 %v501_v56, %v500_v55  ;;  %v561_v61 = vunpack.c.l.b16 %v468_v57  ;;  %v562_v62 = vunpack.c.l.b16 %v469_v58  ;;  %v809_v63 = vsel %vm370_vm12, 1.0, %v888_v45 }
  0x50   : > { %v810_v7 = vsel %vm371_vm13, 1.0, %v888_v45  ;;  %v466_v8 = vpack.c.bf16 %v809_v63, %v809_v63  ;;  %vm352_vm14 = vcmp.eq.s32.totalorder %v986_v40, %v322_v42  ;;  %v499_v10 = vunpack.c.l.b16 %v451_v59 }
  0x51   : > { %518 = vmatpush.bf16.xpose.msra.mxu0 %v509_v60  ;;  %v570_v9 = vpack.c.b16 %v562_v62, %v561_v61  ;;  %v467_v11 = vpack.c.bf16 %v810_v7, %v810_v7  ;;  %vm353_vm15 = vcmp.eq.s32.totalorder %v986_v40, %v323_v43  ;;  %v791_v12 = vsel %vm352_vm14, 1.0, %v888_v45 }
  0x52   : > { %v792_v13 = vsel %vm353_vm15, 1.0, %v888_v45  ;;  %v559_v16 = vunpack.c.l.b16 %v466_v8  ;;  %vm368_vm3 = vcmp.eq.s32.totalorder %v992_v44, %v322_v42  ;;  %vm369_vm4 = vcmp.eq.s32.totalorder %v992_v44, %v323_v43 }
  0x53   : > { %579 = vmatpush.bf16.xpose.msra.mxu1 %v570_v9  ;;  %v560_v17 = vunpack.c.l.b16 %v467_v11  ;;  %v807_v18 = vsel %vm368_vm3, 1.0, %v888_v45  ;;  %v808_v19 = vsel %vm369_vm4, 1.0, %v888_v45  ;;  %v508_v20 = vpack.c.b16 %v499_v10, %v498_v6 }
  0x54   : > { %v448_v21 = vpack.c.bf16 %v791_v12, %v791_v12  ;;  %v449_v22 = vpack.c.bf16 %v792_v13, %v792_v13  ;;  %vm350_vm5 = vcmp.eq.s32.totalorder %v986_v40, %v320_v14  ;;  %v464_v24 = vpack.c.bf16 %v807_v18, %v807_v18 }
  0x55   : > { %v569_v23 = vpack.c.b16 %v560_v17, %v559_v16  ;;  %v465_v25 = vpack.c.bf16 %v808_v19, %v808_v19  ;;  %vm351_vm6 = vcmp.eq.s32.totalorder %v986_v40, %v321_v15  ;;  %vm366_vm7 = vcmp.eq.s32.totalorder %v992_v44, %v320_v14 }
  0x56   : > { %vm367_vm8 = vcmp.eq.s32.totalorder %v992_v44, %v321_v15  ;;  %v496_v26 = vunpack.c.l.b16 %v448_v21  ;;  %v497_v27 = vunpack.c.l.b16 %v449_v22  ;;  %v789_v28 = vsel %vm350_vm5, 1.0, %v888_v45 }
  0x57   : > { %v790_v29 = vsel %vm351_vm6, 1.0, %v888_v45  ;;  %v557_v32 = vunpack.c.l.b16 %v464_v24  ;;  %v558_v34 = vunpack.c.l.b16 %v465_v25  ;;  %v805_v35 = vsel %vm366_vm7, 1.0, %v888_v45 }
  0x58   : > { %v806_v36 = vsel %vm367_vm8, 1.0, %v888_v45  ;;  %v507_v37 = vpack.c.b16 %v497_v27, %v496_v26  ;;  %v446_v38 = vpack.c.bf16 %v789_v28, %v789_v28  ;;  %v447_v39 = vpack.c.bf16 %v790_v29, %v790_v29 }
  0x59   : > { %519 = vmatpush.bf16.xpose.msra.mxu0 %v508_v20  ;;  %v462_v41 = vpack.c.bf16 %v805_v35, %v805_v35  ;;  %v463_v42 = vpack.c.bf16 %v806_v36, %v806_v36  ;;  %v568_v43 = vpack.c.b16 %v558_v34, %v557_v32  ;;  %vm348_vm9 = vcmp.eq.s32.totalorder %v986_v40, %v318_v30 }
  0x5a   : > { %vm349_vm10 = vcmp.eq.s32.totalorder %v986_v40, %v319_v31  ;;  %v494_v46 = vunpack.c.l.b16 %v446_v38  ;;  %v495_v47 = vunpack.c.l.b16 %v447_v39  ;;  %vm364_vm11 = vcmp.eq.s32.totalorder %v992_v44, %v318_v30 }
  0x5b   : > { %580 = vmatpush.bf16.xpose.msra.mxu1 %v569_v23  ;;  %vm365_vm12 = vcmp.eq.s32.totalorder %v992_v44, %v319_v31  ;;  %v555_v48 = vunpack.c.l.b16 %v462_v41  ;;  %v556_v49 = vunpack.c.l.b16 %v463_v42  ;;  %v787_v50 = vsel %vm348_vm9, 1.0, %v888_v45 }
  0x5c   : > { %v788_v51 = vsel %vm349_vm10, 1.0, %v888_v45  ;;  %v316_v52 = vadd.s32 32, %v980_v33  ;;  %v317_v53 = vadd.s32 40, %v980_v33  ;;  %v803_v54 = vsel %vm364_vm11, 1.0, %v888_v45 }
  0x5d   : > { %v804_v55 = vsel %vm365_vm12, 1.0, %v888_v45  ;;  %v506_v56 = vpack.c.b16 %v495_v47, %v494_v46  ;;  %v444_v57 = vpack.c.bf16 %v787_v50, %v787_v50  ;;  %v445_v58 = vpack.c.bf16 %v788_v51, %v788_v51 }
  0x5e   : > { %v567_v59 = vpack.c.b16 %v556_v49, %v555_v48  ;;  %v460_v60 = vpack.c.bf16 %v803_v54, %v803_v54  ;;  %v461_v61 = vpack.c.bf16 %v804_v55, %v804_v55  ;;  %vm346_vm13 = vcmp.eq.s32.totalorder %v986_v40, %v316_v52 }
  0x5f   : > { %vm347_vm14 = vcmp.eq.s32.totalorder %v986_v40, %v317_v53  ;;  %vm362_vm15 = vcmp.eq.s32.totalorder %v992_v44, %v316_v52  ;;  %vm363_vm3 = vcmp.eq.s32.totalorder %v992_v44, %v317_v53  ;;  %v492_v62 = vunpack.c.l.b16 %v444_v57 }
  0x60   : > { %v493_v63 = vunpack.c.l.b16 %v445_v58  ;;  %v785_v6 = vsel %vm346_vm13, 1.0, %v888_v45  ;;  %v786_v7 = vsel %vm347_vm14, 1.0, %v888_v45  ;;  %v314_v8 = vadd.s32 16, %v980_v33 }
  0x61   : > { %520 = vmatpush.bf16.xpose.msra.mxu0 %v507_v37  ;;  %v315_v9 = vadd.s32 24, %v980_v33  ;;  %v553_v10 = vunpack.c.l.b16 %v460_v60  ;;  %v554_v11 = vunpack.c.l.b16 %v461_v61  ;;  %v801_v12 = vsel %vm362_vm15, 1.0, %v888_v45 }
  0x62   : > { %v802_v13 = vsel %vm363_vm3, 1.0, %v888_v45  ;;  %v505_v14 = vpack.c.b16 %v493_v63, %v492_v62  ;;  %v442_v15 = vpack.c.bf16 %v785_v6, %v785_v6  ;;  %v443_v16 = vpack.c.bf16 %v786_v7, %v786_v7 }
  0x63   : > { %581 = vmatpush.bf16.xpose.msra.mxu1 %v568_v43  ;;  %v458_v17 = vpack.c.bf16 %v801_v12, %v801_v12  ;;  %v459_v18 = vpack.c.bf16 %v802_v13, %v802_v13  ;;  %v889_v19 = vmov 0   ;;  %v566_v21 = vpack.c.b16 %v554_v11, %v553_v10 }
  0x64   : > { %v266_v20 = vsel %vm264_vm0, 1, %v889_v19  ;;  %vm344_vm4 = vcmp.eq.s32.totalorder %v986_v40, %v314_v8  ;;  %vm345_vm5 = vcmp.eq.s32.totalorder %v986_v40, %v315_v9  ;;  %v490_v24 = vunpack.c.l.b16 %v442_v15 }
  0x65   : > { %v271_v22 = vsel %vm269_vm1, 2, %v266_v20  ;;  %v491_v25 = vunpack.c.l.b16 %v443_v16  ;;  %vm360_vm6 = vcmp.eq.s32.totalorder %v992_v44, %v314_v8  ;;  %vm361_vm0 = vcmp.eq.s32.totalorder %v992_v44, %v315_v9 }
  0x66   : > { %v276_v23 = vsel %vm274_vm2, 3, %v271_v22  ;;  %v551_v0 = vunpack.c.l.b16 %v458_v17  ;;  %v552_v1 = vunpack.c.l.b16 %v459_v18  ;;  %v783_v26 = vsel %vm344_vm4, 1.0, %v888_v45 }
  0x67   : > { %296 = vst [vmem:[%s252_s26] sm:$0x3] %v276_v23  ;;  %v784_v27 = vsel %vm345_vm5, 1.0, %v888_v45  ;;  %v799_v3 = vsel %vm360_vm6, 1.0, %v888_v45  ;;  %v800_v4 = vsel %vm361_vm0, 1.0, %v888_v45  ;;  %v504_v5 = vpack.c.b16 %v491_v25, %v490_v24 }
  0x68   : > { %v440_v28 = vpack.c.bf16 %v783_v26, %v783_v26  ;;  %v441_v29 = vpack.c.bf16 %v784_v27, %v784_v27  ;;  %v565_v30 = vpack.c.b16 %v552_v1, %v551_v0  ;;  %v456_v31 = vpack.c.bf16 %v799_v3, %v799_v3 }
  0x69   : > { %521 = vmatpush.bf16.xpose.msra.mxu0 %v506_v56  ;;  %v457_v32 = vpack.c.bf16 %v800_v4, %v800_v4  ;;  %vm342_vm1 = vcmp.eq.s32.totalorder %v986_v40, %v980_v33  ;;  %vm343_vm2 = vcmp.eq.s32.totalorder %v986_v40, %v313_v2  ;;  %vm358_vm7 = vcmp.eq.s32.totalorder %v992_v44, %v980_v33 }
  0x6a   : > { %v488_v34 = vunpack.c.l.b16 %v440_v28  ;;  %v489_v35 = vunpack.c.l.b16 %v441_v29  ;;  %vm359_vm8 = vcmp.eq.s32.totalorder %v992_v44, %v313_v2  ;;  %v781_v36 = vsel %vm342_vm1, 1.0, %v888_v45 }
  0x6b   : > { %582 = vmatpush.bf16.xpose.msra.mxu1 %v567_v59  ;;  %v782_v37 = vsel %vm343_vm2, 1.0, %v888_v45  ;;  %v549_v38 = vunpack.c.l.b16 %v456_v31  ;;  %v550_v39 = vunpack.c.l.b16 %v457_v32  ;;  %v797_v41 = vsel %vm358_vm7, 1.0, %v888_v45 }
  0x6c   : > { %v798_v42 = vsel %vm359_vm8, 1.0, %v888_v45  ;;  %v503_v40 = vpack.c.b16 %v489_v35, %v488_v34  ;;  %v438_v43 = vpack.c.bf16 %v781_v36, %v781_v36  ;;  %v439_v46 = vpack.c.bf16 %v782_v37, %v782_v37 }
  0x6d   : > { %v564_v47 = vpack.c.b16 %v550_v39, %v549_v38  ;;  %v454_v48 = vpack.c.bf16 %v797_v41, %v797_v41  ;;  %v455_v49 = vpack.c.bf16 %v798_v42, %v798_v42  ;;  %v328_v53 = vrot.slane %v276_v23, 1 }
  0x6e   : > { %v486_v50 = vunpack.c.l.b16 %v438_v43  ;;  %v487_v44 = vunpack.c.l.b16 %v439_v46  ;;  %v329_v55 = vperm.slane %v276_v23, 0  ;;  %v890_v45 = vmov 1.0|1.0  }
  0x6f   : > { %v547_v51 = vunpack.c.l.b16 %v454_v48  ;;  %v548_v52 = vunpack.c.l.b16 %v455_v49  ;;  %v330_v57 = vperm.slane %v328_v53, 0 }
  0x70   : > { %v502_v54 = vpack.c.b16 %v487_v44, %v486_v50  ;;  %vm331_vm9 = vcmp.eq.s32.totalorder %v329_v55, %v980_v33 }
  0x71   : > { %522 = vmatpush.bf16.xpose.msra.mxu0 %v505_v14  ;;  %v563_v56 = vpack.c.b16 %v548_v52, %v547_v51  ;;  %vm332_vm10 = vcmp.eq.s32.totalorder %v330_v57, %v980_v33  ;;  %vm813_vm11 = vmpackc.low %vm331_vm9, %vm331_vm9 }
  0x72   : > { %vm815_vm12 = vmpackc.low %vm332_vm10, %vm332_vm10 }
  0x73   : > { %583 = vmatpush.bf16.xpose.msra.mxu1 %v566_v21 }
  0x79   : > { %523 = vmatpush.bf16.xpose.msra.mxu0 %v504_v5 }
  0x7b   : > { %584 = vmatpush.bf16.xpose.msra.mxu1 %v565_v30 }
  0x81   : > { %524 = vmatpush.bf16.xpose.msra.mxu0 %v503_v40 }
  0x83   : > { %585 = vmatpush.bf16.xpose.msra.mxu1 %v564_v47 }
  0x89   : > { %525 = vmatpush.bf16.xpose.msra.mxu0 %v502_v54 }
  0x8b   : > { %586 = vmatpush.bf16.xpose.msra.mxu1 %v563_v56 }
  0x90   : > { %814 = vmatmul.msk.bf16.vlgmr.msra.gmra.mxu0 %vm813_vm11, %v890_v45 }
  0x92   : > { %816 = vmatmul.msk.bf16.vlgmr.msra.gmra.mxu1 %vm815_vm12, %v890_v45 }
 0x10d   : > { %v527_v58 = vpop.f32.mrf.mxu0 }
 0x10f   : > { %v588_v59 = vpop.f32.mrf.mxu1 }
 0x110   : > { %v592_v60 = vadd.f32 %v588_v59, %v527_v58 }
 0x112   : > { %596 = vst [vmem:[%s260_s29] sm:$0xff] %v592_v60 }
 0x115   : > { %v529_v61 = vpop.f32.mrf.mxu0 }
 0x117   : > { %v590_v62 = vpop.f32.mrf.mxu1 }
 0x118 PF: > { %s14_s14 = sadd.s32 1, %s886_s14   ;;  %s1101_s12 = smov %s882_s13 }
 0x119   : > { %p11_p5 = scmp.ge.s32.totalorder %s14_s14, 4   ;;  %s1102_s13 = smov %s1104_s15 }
 0x11b   :  { %13 = sbr.rel (!%p11_p5) target bundleno = 2 (0x2), region = 85 }

</bundles_post_ra>
